<compile_context>
chip_gen: v7x
topology: tpu7x:2x2x1
jax: 0.10.0
libtpu: 0.0.40
codegen_flags: <defaults>
</compile_context>

<pallas_src>
import jax
import jax.numpy as jnp
from jax import lax
from jax.experimental import pallas as pl
from jax.experimental.pallas import tpu as pltpu

# Tokens gathered per grid step. 128 rows in flight per step amortizes the
# ~0.35 us per-grid-step overhead to ~3 ns/token while keeping the output block
# (double-buffered) at 2 * 128 * D * 4 bytes of VMEM.
TOKEN_TILE = 128


def _gather_kernel(ids_ref, table_hbm, out_ref, sem):
    # ids_ref:   (N_pad,) int32, SMEM (scalar prefetch; whole array resident)
    # table_hbm: (V, D)   float32, HBM (pl.ANY) -- rows fetched on demand
    # out_ref:   (TOKEN_TILE, D) float32, VMEM output block for this grid step
    # sem:       scalar DMA semaphore shared by all row copies of this step
    base = pl.program_id(0) * TOKEN_TILE

    # Issue all row DMAs for this tile (TOKEN_TILE copies in flight at once).
    def _issue(r, carry):
        idx = ids_ref[base + r]
        pltpu.make_async_copy(
            table_hbm.at[pl.ds(idx, 1), :],
            out_ref.at[pl.ds(r, 1), :],
            sem,
        ).start()
        return carry

    lax.fori_loop(0, TOKEN_TILE, _issue, 0)

    # Drain: each wait decrements the semaphore by one row's worth of bytes.
    def _drain(r, carry):
        pltpu.make_async_copy(
            table_hbm.at[pl.ds(0, 1), :],
            out_ref.at[pl.ds(r, 1), :],
            sem,
        ).wait()
        return carry

    lax.fori_loop(0, TOKEN_TILE, _drain, 0)


def embedding_lookup(ids_flat, table):
    """Gather rows of `table` (V, D) at integer indices `ids_flat` (N,)."""
    N = int(ids_flat.shape[0])
    V, D = table.shape
    N_pad = ((N + TOKEN_TILE - 1) // TOKEN_TILE) * TOKEN_TILE

    ids = ids_flat.astype(jnp.int32)
    # torch.nn.Embedding raises on out-of-range ids; a TPU kernel cannot raise and
    # an unclamped id would be an out-of-bounds DMA, so clamp defensively.
    ids = jnp.clip(ids, 0, V - 1)
    ids_p = jnp.pad(ids, (0, N_pad - N))  # pad with id 0 (rows sliced off below)

    bytes_accessed = N_pad * D * table.dtype.itemsize * 2 + N_pad * 4

    out = pl.pallas_call(
        _gather_kernel,
        out_shape=jax.ShapeDtypeStruct((N_pad, D), table.dtype),
        grid_spec=pltpu.PrefetchScalarGridSpec(
            num_scalar_prefetch=1,                         # ids -> SMEM
            grid=(N_pad // TOKEN_TILE,),
            in_specs=[pl.BlockSpec(memory_space=pl.ANY)],  # table stays in HBM
            out_specs=pl.BlockSpec((TOKEN_TILE, D), lambda i, ids: (i, 0)),
            scratch_shapes=[pltpu.SemaphoreType.DMA],
        ),
        compiler_params=pltpu.CompilerParams(
            dimension_semantics=("parallel",)),
        cost_estimate=pl.CostEstimate(
            flops=0, transcendentals=0, bytes_accessed=int(bytes_accessed)),
    )(ids_p, table)
    return out[:N]


class EmbeddingModuleJax:
    """JAX/Pallas port of Archi EmbeddingModule (forward pass only)."""

    def __init__(self, num_embeddings, embedding_dim, padding_idx=None,
                 max_norm=None, key=None):
        self.num_embeddings = num_embeddings
        self.embedding_dim = embedding_dim
        self.padding_idx = padding_idx
        self.max_norm = max_norm  # TODO(synk): max_norm in-place renorm not implemented (None in default config)
        if key is None:
            key = jax.random.PRNGKey(0)
        # nn.Embedding default init: N(0, 1); padding_idx row zeroed.
        w = jax.random.normal(key, (num_embeddings, embedding_dim), jnp.float32)
        if padding_idx is not None:
            w = w.at[padding_idx].set(0.0)
        self.weight = w
        self.feature_dim = embedding_dim

    def forward(self, x):
        shape_len = x.ndim
        ids_flat = x.reshape(-1).astype(jnp.int32)
        out = embedding_lookup(ids_flat, self.weight)          # (N, D)
        out = out.reshape(x.shape + (self.embedding_dim,))     # x.shape + (D,)
        # torch: while len(out.shape) != shape_len: out = out.squeeze(1)
        while out.ndim != shape_len and out.shape[1] == 1:
            out = jnp.squeeze(out, axis=1)
        return out

    def get_feature_shape(self):
        return self.feature_dim


if __name__ == "__main__":
    V, D = 16, 32          # num_embeddings, embedding_dim
    B, S = 2, 1            # batch, tokens-per-batch (module squeezes the S=1 dim)

    key = jax.random.PRNGKey(0)
    k_w, k_x, k_x2 = jax.random.split(key, 3)

    mod = EmbeddingModuleJax(num_embeddings=V, embedding_dim=D, key=k_w)
    x = jax.random.randint(k_x, (B, S), 0, V, dtype=jnp.int32)

    out = mod.forward(x)
    out = jax.block_until_ready(out)

    # sanity check against plain-JAX gather (mirrors torch nn.Embedding semantics)
    ref = jnp.take(mod.weight, x.reshape(-1), axis=0).reshape(B, S, D)
    while ref.ndim != x.ndim and ref.shape[1] == 1:
        ref = jnp.squeeze(ref, axis=1)
    assert out.shape == (B, D), out.shape
    assert jnp.allclose(out, ref, atol=1e-6), "mismatch vs reference gather"

    # second check: enough tokens to cover multiple grid steps + tile padding
    x2 = jax.random.randint(k_x2, (160, 1), 0, V, dtype=jnp.int32)
    out2 = jax.block_until_ready(mod.forward(x2))
    ref2 = jnp.take(mod.weight, x2.reshape(-1), axis=0).reshape(160, D)
    assert out2.shape == (160, D), out2.shape
    assert jnp.allclose(out2, ref2, atol=1e-6), "mismatch vs reference gather (multi-tile)"

    print("KERNEL_OK")
</pallas_src>

<mosaic_0001>
module attributes {stable_mosaic.version = 11 : i64} {
  func.func @_gather_kernel(%arg0: i32, %arg1: memref<128xi32, #tpu.memory_space<smem>>, %arg2: memref<16x32xf32, #tpu.memory_space<any>>, %arg3: memref<128x32xf32, #tpu.memory_space<vmem>>, %arg4: memref<!tpu.dma_semaphore, #tpu.memory_space<semaphore_mem>>) attributes {dimension_semantics = [#tpu.dimension_semantics<parallel>], iteration_bounds = array<i64: 1>, scalar_prefetch = 1 : i64, scratch_operands = 1 : i64, tpu.core_type = #tpu.core_type<tc>, window_params = [{}, {transform_indices = @transform_1, window_bounds = array<i64: 128, 32>}]} {
    %c128_i32 = arith.constant 128 : i32
    %0 = arith.muli %arg0, %c128_i32 : i32
    %c0_i32 = arith.constant 0 : i32
    %c128_i32_0 = arith.constant 128 : i32
    %1 = arith.addi %c0_i32, %c128_i32_0 : i32
    %c1_i32 = arith.constant 1 : i32
    scf.for %arg5 = %c0_i32 to %1 step %c1_i32  : i32 {
      %3 = arith.addi %0, %arg5 : i32
      %4 = arith.index_cast %3 : i32 to index
      %5 = memref.load %arg1[%4] : memref<128xi32, #tpu.memory_space<smem>>
      %c0_i32_6 = arith.constant 0 : i32
      %6 = tpu.memref_slice %arg2[%5, %c0_i32_6] : memref<16x32xf32, #tpu.memory_space<any>> -> memref<1x32xf32, #tpu.memory_space<any>>
      %c0_i32_7 = arith.constant 0 : i32
      %7 = tpu.memref_slice %arg3[%arg5, %c0_i32_7] : memref<128x32xf32, #tpu.memory_space<vmem>> -> memref<1x32xf32, #tpu.memory_space<vmem>>
      tpu.enqueue_dma source(%6 : memref<1x32xf32, #tpu.memory_space<any>>) target(%7 : memref<1x32xf32, #tpu.memory_space<vmem>>) target_semaphore(%arg4 : memref<!tpu.dma_semaphore, #tpu.memory_space<semaphore_mem>>)
    }
    %c128_i32_1 = arith.constant 128 : i32
    %c0_i32_2 = arith.constant 0 : i32
    %c128_i32_3 = arith.constant 128 : i32
    %2 = arith.addi %c0_i32_2, %c128_i32_3 : i32
    %c1_i32_4 = arith.constant 1 : i32
    scf.for %arg5 = %c0_i32_2 to %2 step %c1_i32_4  : i32 {
      %c0_i32_6 = arith.constant 0 : i32
      %c0_i32_7 = arith.constant 0 : i32
      %3 = tpu.memref_slice %arg2[%c0_i32_6, %c0_i32_7] : memref<16x32xf32, #tpu.memory_space<any>> -> memref<1x32xf32, #tpu.memory_space<any>>
      %c0_i32_8 = arith.constant 0 : i32
      %4 = tpu.memref_slice %arg3[%arg5, %c0_i32_8] : memref<128x32xf32, #tpu.memory_space<vmem>> -> memref<1x32xf32, #tpu.memory_space<vmem>>
      tpu.wait_dma2 semaphore(%arg4 : memref<!tpu.dma_semaphore, #tpu.memory_space<semaphore_mem>>) src(%3 : memref<1x32xf32, #tpu.memory_space<any>>) dst(%4 : memref<1x32xf32, #tpu.memory_space<vmem>>)
    }
    %c128_i32_5 = arith.constant 128 : i32
    return
  }
  func.func @transform_1(%arg0: i32, %arg1: memref<128xi32, #tpu.memory_space<smem>>) -> (i32, i32) {
    %c0_i32 = arith.constant 0 : i32
    %c0_i32_0 = arith.constant 0 : i32
    return %arg0, %c0_i32 : i32, i32
  }
}

</mosaic_0001>

<bundles_post_ra>
// kernel: tpu_custom_call.1
= control target key start
LH: loop header
LB: loop body
LE: loop exit
PB: predicated region body
PF: predicated region fallthrough
CT: control target
= control target key end

     0   :  { %s192_s0 = inlined_call_operand.hbm [shape: s32[128], index: 0, kind: input, shape index: {}]   ;;  %s193_s1 = inlined_call_operand.hbm [shape: f32[16,32], index: 1, kind: input, shape index: {}]   ;;  %s194_s2 = inlined_call_operand.vmem [shape: f32[128,32], index: 2, kind: output, shape index: {}]  }
   0x1   :  { %s85_s11 = scalar_lea.hbm %s192_s0, 16 }
   0x2   :  { %p86_p0 = scmp.ne.s32.totalorder %s192_s0, %s85_s11  ;;  %p89_p1 = scmp.lt.u32.totalorder %s85_s11, %s192_s0 }
   0x4   :  { %p91_p2 = pnand %p89_p1, %p86_p0 }
   0x6   :  { %94 = shalt.err (!%p91_p2)  }
   0x7   :  { %s139_s16 = smov [#allocation4]  }
   0x8   :  { %8 = dma.hbm_to_smem %s192_s0, 16, %s139_s16, [#allocation3] }
   0x9   :  { %127 = dma.done.wait [#allocation3], 16 }
   0xa   :  { %128 = vsyncadd [#allocation3], 4294967280 }
   0xb   :  { %10 = sfence }
   0xc   :  { %s167_s19 = smov 0  }
   0xd LB: > { %s19_s20 = sld [smem:[#allocation4 + %s133_s19]]  ;;  %s22_s23 = scalar_lea.vmem %s194_s2, %s133_s19  ;;  %s133_s19 = sphi %s167_s19, %s17_s19  }
   0xe   : > { %s30_s24 = sshll.u32 %s22_s23, 4  ;;  %s97_s3 = scalar_lea.hbm %s193_s1, 256  ;;  %s31_s24 = int_to_ptr.vmem [resolvable:$true] %s30_s24 }
  0x13   : > { %s66_s0 = sshll.u32 %s19_s20, 4 }
  0x14   : > { %s21_s27 = scalar_lea.hbm %s193_s1, %s66_s0 }
  0x15   : > { %s95_s28 = scalar_lea.hbm %s21_s27, 16  ;;  %p98_p4 = scmp.lt.u32.totalorder %s21_s27, %s193_s1 }
  0x16   : > { %p96_p3 = scmp.ne.s32.totalorder %s21_s27, %s95_s28  ;;  %p99_p5 = scmp.lt.u32.totalorder %s97_s3, %s95_s28 }
  0x17   : > { %p101_p7 = scmp.lt.u32.totalorder %s95_s28, %s21_s27 }
  0x18   : > { %p100_p6 = por %p99_p5, %p98_p4 }
  0x1a   : > { %p102_p8 = por %p101_p7, %p100_p6 }
  0x1c   : > { %p103_p9 = pnand %p102_p8, %p96_p3 }
  0x1e   : > { %106 = shalt.err (!%p103_p9)  }
  0x1f   : > { %s107_s6 = scalar_lea.vmem %s31_s24, 16  ;;  %s109_s9 = sshll.u32 %s194_s2, 4  ;;  %s110_s9 = int_to_ptr.vmem [resolvable:$false] %s109_s9 }
  0x20   : > { %p108_p10 = scmp.ne.s32.totalorder %s31_s24, %s107_s6  ;;  %s111_s10 = scalar_lea.vmem %s110_s9, 2048 }
  0x21   : > { %p112_p11 = scmp.lt.s32.totalorder %s31_s24, %s110_s9  ;;  %p113_p12 = scmp.lt.s32.totalorder %s111_s10, %s107_s6 }
  0x23   : > { %p114_p13 = por %p113_p12, %p112_p11 }
  0x25   : > { %p115_p0 = pnand %p114_p13, %p108_p10 }
  0x27   : > { %118 = shalt.err (!%p115_p0)  }
  0x28   : > { %33 = dma.hbm_to_vmem [thread:$0]  %s21_s27, 16, %s31_s24, [#allocation2] }
  0x29   : > { %s17_s19 = sadd.s32 1, %s133_s19  }
  0x2a   : > { %p14_p1 = scmp.ge.s32.totalorder %s17_s19, 128  }
  0x2b   :  { %s135_s11 = smov (%p14_p1), 0  }
  0x2c   :  { %16 = sbr.rel (!%p14_p1) target bundleno = 13 (0xd), region = 40 }
  0x33 LB: > { %129 = dma.done.wait [#allocation2], 16  ;;  %s137_s11 = sphi %s135_s11, %s39_s11  }
  0x34   : > { %130 = vsyncadd [#allocation2], 4294967280  ;;  %s39_s11 = sadd.s32 1, %s137_s11  }
  0x35   : > { %p36_p2 = scmp.ge.s32.totalorder %s39_s11, 128  }
  0x37   :  { %38 = sbr.rel (!%p36_p2) target bundleno = 51 (0x33), region = 51 }
  0x3e   :  { %47 = vsyncmov [#allocation2] }
  0x41   :  { %s48_s12 = vpop.sfrf %47 }
  0x42   :  { %p67_p3 = scmp.ne.s32.totalorder %s48_s12, 0 }
  0x44   :  { %52 = shalt.err (%p67_p3)  }

</bundles_post_ra>
